<compile_context>
chip_gen: v6e
topology: v6e:2x2x1
jax: 0.10.0
libtpu: 0.0.40
codegen_flags: <defaults>
</compile_context>

<pallas_src>
import jax
import jax.numpy as jnp
from jax.experimental import pallas as pl
from jax.experimental.pallas import tpu as pltpu


def _analogy_kernel(x_ref, w_ref, b_ref, o_ref):
    """One batch tile: o = x @ W + bias   (x: (bm,3E) bf16, W: (3E,Ep) bf16, f32 acc)."""
    o_ref[...] = (
        jnp.dot(x_ref[...], w_ref[...], preferred_element_type=jnp.float32)
        + b_ref[...]
    ).astype(o_ref.dtype)


def prepare_params(w_ab, b_ab, w_d, b_d, *, param_dtype=jnp.bfloat16, lane_multiple=128):
    """One-time fold of the PyTorch-layout params into a single matmul.

    Transposes to (in, out), composes the two linear layers in f32, stacks the three
    per-input weights into one (3E, Ep) RHS, lane-pads the output dim to a multiple of
    128 (unmasked stores, better MXU N fill), and casts to bf16 ONCE. Call outside the
    per-step forward.
    """
    two_e = w_ab.shape[0]
    E = two_e // 2

    wab_t = jnp.transpose(w_ab).astype(jnp.float32)    # (2E, 2E), (in, out)
    wd_t = jnp.transpose(w_d).astype(jnp.float32)      # (4E, E),  (in, out)
    wab_top, wab_bot = wab_t[:E], wab_t[E:]             # multiply a / (b or c)
    wd_ab, wd_ac = wd_t[:2 * E], wd_t[2 * E:]            # multiply ab / ac
    wd_sum = wd_ab + wd_ac

    A = wab_top @ wd_sum                                 # (E, E)
    Bm = wab_bot @ wd_ab                                 # (E, E)
    Cm = wab_bot @ wd_ac                                 # (E, E)
    bias = b_ab.astype(jnp.float32) @ wd_sum + b_d.astype(jnp.float32)   # (E,)

    W = jnp.concatenate([A, Bm, Cm], axis=0)             # (3E, E) f32

    Ep = pl.cdiv(E, lane_multiple) * lane_multiple if lane_multiple else E
    if Ep != E:
        W = jnp.pad(W, ((0, 0), (0, Ep - E)))
        bias = jnp.pad(bias, (0, Ep - E))

    return W.astype(param_dtype), bias.reshape(1, Ep).astype(jnp.float32)


def _pick_bm(B, block_batch):
    """Batch tile: multiple of 16 (bf16 packing); >=2 grid steps for megacore when the
    batch is big enough that each step still gets >=128 rows."""
    def r16(x):
        return max(16, (x // 16) * 16)

    bm = r16(min(block_batch, B))
    if B >= 256 and pl.cdiv(B, bm) < 2:
        bm = r16(pl.cdiv(B, 2))
    return bm


def _vmem_limit_bytes():
    """Generation-aware scoped-VMEM limit: 32 MiB on v7x (64 MiB/TC), 48 MiB elsewhere."""
    cap = 128 * 1024 * 1024
    try:
        cap = pltpu.get_tpu_info().vmem_capacity_bytes
    except Exception:
        pass  # capability probe only; never masks kernel compile errors
    return min(48 * 1024 * 1024, cap // 2)


def analogy_regression_shared(a, b, c, params, *, block_batch=512, out_dtype=None):
    """Forward pass. a, b, c: (B, E); params: output of prepare_params().

    Precision note: inputs are cast to bf16 and the folded weights are bf16 (composed
    in f32, rounded once); accumulation is f32. Results match the f32 reference at
    bf16-input precision. Pass out_dtype=jnp.bfloat16 when downstream accepts it to
    save ~25-33% of remaining HBM writeback bytes.
    """
    W, bias = params
    B, E = a.shape
    three_e, Ep = W.shape
    out_dtype = a.dtype if out_dtype is None else out_dtype

    bm = _pick_bm(B, block_batch)
    Bp = pl.cdiv(B, bm) * bm

    # Lane-concat + bf16 cast in one fused XLA pass: gives a single K=3E LHS for the
    # folded matmul (no in-kernel concats/casts) with the same HBM byte count as
    # casting the three inputs separately.
    x = jnp.concatenate([a, b, c], axis=-1).astype(W.dtype)      # (B, 3E) bf16
    if Bp != B:                                                   # ragged batch: pad
        x = jnp.pad(x, ((0, Bp - B), (0, 0)))

    cost = pl.CostEstimate(
        flops=2 * Bp * three_e * Ep,
        transcendentals=0,
        bytes_accessed=(Bp * three_e * jnp.dtype(W.dtype).itemsize
                        + three_e * Ep * jnp.dtype(W.dtype).itemsize
                        + Ep * 4
                        + Bp * Ep * jnp.dtype(out_dtype).itemsize),
    )

    out = pl.pallas_call(
        _analogy_kernel,
        out_shape=jax.ShapeDtypeStruct((Bp, Ep), out_dtype),
        grid_spec=pltpu.PrefetchScalarGridSpec(
            num_scalar_prefetch=0,
            grid=(Bp // bm,),
            in_specs=[
                pl.BlockSpec((bm, three_e), lambda i: (i, 0)),   # activations (tiled)
                pl.BlockSpec((three_e, Ep), lambda i: (0, 0)),   # folded weights
                pl.BlockSpec((1, Ep), lambda i: (0, 0)),         # folded bias
            ],
            out_specs=pl.BlockSpec((bm, Ep), lambda i: (i, 0)),
        ),
        compiler_params=pltpu.CompilerParams(
            dimension_semantics=("parallel",),    # batch tiles shard across TCs on v7x
            vmem_limit_bytes=_vmem_limit_bytes()),
        cost_estimate=cost,
    )(x, W, bias)

    # Slice away batch padding and the lane padding of the output dim.
    return out[:B, :E]


def _reference(a, b, c, w_ab, b_ab, w_d, b_d):
    ab = jnp.concatenate([a, b], axis=-1) @ w_ab.T + b_ab
    ac = jnp.concatenate([a, c], axis=-1) @ w_ab.T + b_ab
    return jnp.concatenate([ab, ac], axis=-1) @ w_d.T + b_d


if __name__ == "__main__":
    key = jax.random.PRNGKey(0)
    B, E = 64, 32

    k = jax.random.split(key, 7)
    a = jax.random.normal(k[0], (B, E), dtype=jnp.float32)
    b = jax.random.normal(k[1], (B, E), dtype=jnp.float32)
    c = jax.random.normal(k[2], (B, E), dtype=jnp.float32)

    # PyTorch-layout parameters: weight (out_features, in_features), bias (out_features,).
    w_ab = jax.random.normal(k[3], (2 * E, 2 * E), dtype=jnp.float32) * 0.1
    b_ab = jax.random.normal(k[4], (2 * E,), dtype=jnp.float32) * 0.1
    w_d = jax.random.normal(k[5], (E, 4 * E), dtype=jnp.float32) * 0.1
    b_d = jax.random.normal(k[6], (E,), dtype=jnp.float32) * 0.1

    params = prepare_params(w_ab, b_ab, w_d, b_d)   # fold / transpose / pad / cast once
    ref = _reference(a, b, c, w_ab, b_ab, w_d, b_d)

    # Small block_batch so the demo exercises a multi-step "parallel" grid (pipelining,
    # megacore sharding on v7x); realistic sizes would use the 512-row default.
    out = jax.block_until_ready(
        analogy_regression_shared(a, b, c, params, block_batch=16))
    assert out.shape == (B, E)
    assert jnp.allclose(out, ref, atol=1e-1, rtol=5e-2), (
        float(jnp.max(jnp.abs(out - ref))))

    # Ragged batch exercises the pad-and-slice path.
    out_r = jax.block_until_ready(
        analogy_regression_shared(a[:13], b[:13], c[:13], params, block_batch=16))
    assert out_r.shape == (13, E)
    assert jnp.allclose(out_r, ref[:13], atol=1e-1, rtol=5e-2), (
        float(jnp.max(jnp.abs(out_r - ref[:13]))))

    print("KERNEL_OK")
</pallas_src>

<mosaic_0001>
module attributes {stable_mosaic.version = 11 : i64} {
  func.func @_analogy_kernel(%arg0: i32, %arg1: memref<16x96xbf16, #tpu.memory_space<vmem>>, %arg2: memref<96x128xbf16, #tpu.memory_space<vmem>>, %arg3: memref<1x128xf32, #tpu.memory_space<vmem>>, %arg4: memref<16x128xf32, #tpu.memory_space<vmem>>) attributes {dimension_semantics = [#tpu.dimension_semantics<parallel>], iteration_bounds = array<i64: 4>, scalar_prefetch = 0 : i64, scratch_operands = 0 : i64, tpu.core_type = #tpu.core_type<tc>, window_params = [{transform_indices = @transform_0, window_bounds = array<i64: 16, 96>}, {pipeline_mode = #tpu.pipeline_mode<synchronous>, transform_indices = @transform_1, window_bounds = array<i64: 96, 128>}, {pipeline_mode = #tpu.pipeline_mode<synchronous>, transform_indices = @transform_2, window_bounds = array<i64: 1, 128>}, {transform_indices = @transform_3, window_bounds = array<i64: 16, 128>}]} {
    %c0 = arith.constant 0 : index
    %c0_0 = arith.constant 0 : index
    %0 = vector.load %arg1[%c0, %c0_0] : memref<16x96xbf16, #tpu.memory_space<vmem>>, vector<16x96xbf16>
    %c0_1 = arith.constant 0 : index
    %c0_2 = arith.constant 0 : index
    %1 = vector.load %arg2[%c0_1, %c0_2] : memref<96x128xbf16, #tpu.memory_space<vmem>>, vector<96x128xbf16>
    %cst = arith.constant dense<0.000000e+00> : vector<16x128xf32>
    %2 = tpu.matmul %0, %1, %cst {dimension_numbers = #tpu.dot_dimension_numbers<[1], [0], [0], [1], [0, 0, 1, 1], [], []>} : vector<16x96xbf16>, vector<96x128xbf16>, vector<16x128xf32> -> vector<16x128xf32>
    %c0_3 = arith.constant 0 : index
    %c0_4 = arith.constant 0 : index
    %3 = vector.load %arg3[%c0_3, %c0_4] : memref<1x128xf32, #tpu.memory_space<vmem>>, vector<1x128xf32>
    %4 = vector.broadcast %3 : vector<1x128xf32> to vector<16x128xf32>
    %5 = arith.addf %2, %4 : vector<16x128xf32>
    %c0_5 = arith.constant 0 : index
    %c0_6 = arith.constant 0 : index
    %6 = vector.load %arg4[%c0_5, %c0_6] : memref<16x128xf32, #tpu.memory_space<vmem>>, vector<16x128xf32>
    tpu.vector_store %arg4[%c0_5, %c0_6], %5 {strides = array<i32>} : memref<16x128xf32, #tpu.memory_space<vmem>>, vector<16x128xf32>,
    return
  }
  func.func @transform_0(%arg0: i32) -> (i32, i32) {
    %c0_i32 = arith.constant 0 : i32
    %c0_i32_0 = arith.constant 0 : i32
    return %arg0, %c0_i32 : i32, i32
  }
  func.func @transform_1(%arg0: i32) -> (i32, i32) {
    %c0_i32 = arith.constant 0 : i32
    %c0_i32_0 = arith.constant 0 : i32
    %c0_i32_1 = arith.constant 0 : i32
    return %c0_i32, %c0_i32_0 : i32, i32
  }
  func.func @transform_2(%arg0: i32) -> (i32, i32) {
    %c0_i32 = arith.constant 0 : i32
    %c0_i32_0 = arith.constant 0 : i32
    %c0_i32_1 = arith.constant 0 : i32
    return %c0_i32, %c0_i32_0 : i32, i32
  }
  func.func @transform_3(%arg0: i32) -> (i32, i32) {
    %c0_i32 = arith.constant 0 : i32
    %c0_i32_0 = arith.constant 0 : i32
    return %arg0, %c0_i32 : i32, i32
  }
}

</mosaic_0001>

<bundles_post_ra>
// kernel: tpu_custom_call.1
= control target key start
LH: loop header
LB: loop body
LE: loop exit
PB: predicated region body
PF: predicated region fallthrough
CT: control target
= control target key end

     0   :  { %8 = vsyncpa [#allocation3], 0  ;;  %s871_s0 = inlined_call_operand.hbm [shape: bf16[64,96], index: 0, kind: input, shape index: {}]   ;;  %s872_s1 = inlined_call_operand.hbm [shape: bf16[96,128], index: 1, kind: input, shape index: {}]   ;;  %s873_s2 = inlined_call_operand.vmem [shape: f32[1,128], index: 2, kind: input, shape index: {}]   ;;  %s874_s3 = inlined_call_operand.hbm [shape: f32[64,128], index: 3, kind: output, shape index: {}]  }
   0x1   :  { %10 = vsyncpa [#allocation3 + $0x1], 0 }
   0x2   :  { %11 = vsyncpa [#allocation6], 0 }
   0x3   :  { %12 = vsyncpa [#allocation4], 0 }
   0x4   :  { %14 = vsyncpa [#allocation4 + $0x1], 0  ;;  %s686_s12 = smov 0   ;;  %s688_s13 = smov 0  }
   0x5   :  { %s690_s14 = smov 0   ;;  %s692_s15 = smov 0  }
   0x6 LB: > { %s707_s16 = sadd.s32 4294967295, %s655_s15   ;;  %s413_s17 = sadd.s32 4294967294, %s655_s15   ;;  %s655_s15 = sphi %s692_s15, %s895_s15   ;;  %s651_s14 = sphi %s690_s14, %s894_s14   ;;  %s647_s13 = sphi %s688_s13, %s893_s13   ;;  %s643_s12 = sphi %s686_s12, %s892_s12  }
   0x7   : > { %p40_p0 = scmp.ne.s32.totalorder %s647_s13, %s643_s12  ;;  %p875_p1 = scmp.eq.s32.totalorder %s707_s16, 0 }
   0x8   : > { %p112_p3 = scmp.eq.s32.totalorder %s413_s17, 3  ;;  %p414_p5 = scmp.ge.s32.totalorder %s655_s15, 1 }
   0x9   : > { %p716_p4 = por %p875_p1, %p40_p0  ;;  %p119_p7 = scmp.lt.s32.totalorder %s655_s15, 5 }
   0xa   : > { %p721_p6 = por %p112_p3, %p40_p0  ;;  %s657_s21 = smov [#allocation5]  }
   0xb   : > { %s879_s18 = scalar_select %p716_p4, 1, 0 }
   0xc   : > { %s880_s19 = scalar_select %p721_p6, 1, 0 }
   0xd   : > { %p726_p8 = pnand %p414_p5, %p119_p7  ;;  %s131_s22 = sshll.u32 %s657_s21, 4  ;;  %s132_s22 = int_to_ptr.vmem [resolvable:$true] %s131_s22 }
   0xe   : > { %s739_s24 = sadd.s32 1, %s655_s15   ;;  %s27_s25 = sadd.s32 1, %s651_s14 }
   0xf   : > { %s881_s20 = scalar_select %p726_p8, 1, 0 }
  0x10   : > { %p471_p9 = pneg %p726_p8  ;;  %s24_s26 = ssub.s32 %s655_s15, %s739_s24 }
  0x11   : > { %s544_s27 = scalar_lea.vmem %s132_s22, 768  ;;  %p552_p3 = scmp.lt.s32.totalorder %s132_s22, %s132_s22 }
  0x12   : > { %p734_p10 = pnand %p471_p9, %p875_p1  ;;  %p545_p12 = scmp.ne.s32.totalorder %s132_s22, %s544_s27 }
  0x13   : > { %p553_p5 = scmp.lt.s32.totalorder %s544_s27, %s544_s27 }
  0x14   : > { %p535_p11 = pneg %p734_p10 }
  0x15   : > { %p554_p7 = por %p553_p5, %p552_p3 }
  0x16   : > { %p547_p13 = pnand %p545_p12, %p535_p11 }
  0x18   : > { %p548_p0 = pneg %p547_p13 }
  0x1a   : > { %p555_p2 = pnand %p554_p7, %p548_p0 }
  0x1c   : > { %558 = shalt.err (!%p555_p2)
}
  0x1d   : > { %s658_s28 = smov 64   ;;  %s659_s29 = smov 4  }
  0x1e   : > { %474 = dma.hbm_to_vmem [thread:$0]  (!%p734_p10), %s872_s1, 768, %s132_s22, [#allocation6], %s658_s28, %s658_s28, %s659_s29  }
  0x1f   : > { %p25_p2 = scmp.eq.s32.totalorder %s24_s26, 0  ;;  %p34_p9 = scmp.ne.s32.totalorder %s651_s14, %s647_s13 }
  0x20   : > { %p35_p11 = scmp.eq.s32.totalorder %s655_s15, 0  ;;  %p484_p12 = scmp.lt.s32.totalorder %s655_s15, 4 }
  0x21   : > { %s759_s5 = scalar_select %p25_p2, %s651_s14, %s27_s25  }
  0x22   : > { %p36_p13 = por %p35_p11, %p34_p9  ;;  %p883_p0 = scmp.eq.s32.totalorder %s707_s16, 3 }
  0x23   : > { %s148_s7 = sand.u32 1, %s651_s14   ;;  %s438_s8 = sshll.u32 %s655_s15, 7 }
  0x24   : > { %p763_p3 = por %p883_p0, %p34_p9  ;;  %s417_s9 = sshll.u32 %s148_s7, 3 }
  0x25   : > { %s772_s17 = scalar_lea.hbm %s871_s0, %s438_s8  ;;  %s152_s21 = scalar_lea.vmem [#allocation2], %s417_s9 }
  0x26   : > { %s884_s6 = scalar_select %p763_p3, 1, 0 }
  0x27   : > { %s159_s22 = sshll.u32 %s152_s21, 4  ;;  %p774_p10 = pnand %p484_p12, %p36_p13  ;;  %s778_s22 = int_to_ptr.vmem [resolvable:$true] %s159_s22 }
  0x28   : > { %s780_s25 = scalar_lea.sflag [#allocation3], %s148_s7  ;;  %s559_s26 = scalar_lea.hbm %s772_s17, 128 }
  0x29   : > { %p560_p5 = scmp.ne.s32.totalorder %s772_s17, %s559_s26  ;;  %p561_p7 = pneg %p774_p10 }
  0x2a   : > { %s564_s4 = scalar_lea.hbm %s871_s0, 512  ;;  %p565_p11 = scmp.lt.s32.totalorder %s772_s17, %s871_s0 }
  0x2b   : > { %p562_p2 = pnand %p561_p7, %p560_p5  ;;  %p566_p12 = scmp.lt.s32.totalorder %s564_s4, %s559_s26 }
  0x2d   : > { %p563_p9 = pneg %p562_p2  ;;  %p567_p13 = por %p566_p12, %p565_p11 }
  0x2f   : > { %p568_p0 = pnand %p567_p13, %p563_p9 }
  0x31   : > { %571 = shalt.err (!%p568_p0)
}
  0x32   : > { %s572_s7 = scalar_lea.vmem %s778_s22, 128  ;;  %s660_s10 = smov [#allocation2]  }
  0x33   : > { %p573_p1 = scmp.ne.s32.totalorder %s778_s22, %s572_s7  ;;  %s577_s11 = sshll.u32 %s660_s10, 4  ;;  %s578_s11 = int_to_ptr.vmem [resolvable:$false] %s577_s11 }
  0x34   : > { %s579_s21 = scalar_lea.vmem %s578_s11, 256  ;;  %p580_p2 = scmp.lt.s32.totalorder %s778_s22, %s578_s11 }
  0x35   : > { %p575_p6 = pnand %p573_p1, %p561_p7  ;;  %p581_p3 = scmp.lt.s32.totalorder %s579_s21, %s572_s7 }
  0x37   : > { %p576_p5 = pneg %p575_p6  ;;  %p582_p4 = por %p581_p3, %p580_p2 }
  0x39   : > { %p583_p8 = pnand %p582_p4, %p576_p5 }
  0x3b   : > { %586 = shalt.err (!%p583_p8)
}
  0x3c   : > { %478 = dma.hbm_to_vmem [thread:$0]  (!%p774_p10), %s772_s17, 128, %s778_s22, %s780_s25, %s658_s28, %s658_s28, %s659_s29  }
  0x3d   : > { %p886_p1 = scmp.ne.s32.totalorder %s881_s20, 0 }
  0x3e   : > { %s807_s26 = sand.u32 (!%p886_p1), 1, %s647_s13   ;;  %p887_p4 = scmp.ne.s32.totalorder (!%p886_p1), %s879_s18, 0 }
  0x3f   : > { %171 = sbr.rel (%p886_p1) target bundleno = 310 (0x136), region = 32  ;;  %s421_s27 = sshll.u32 (!%p886_p1), %s807_s26, 3 }
  0x40   : > { %s174_s30 = scalar_lea.sflag (!%p886_p1), [#allocation3], %s807_s26  ;;  %s177_s4 = scalar_lea.vmem (!%p886_p1), [#allocation2], %s421_s27 }
  0x44   : > { %630 = dma.done.wait (%p887_p4), %s174_s30, 128  }
  0x45   : > { %632 = vsyncadd (%p887_p4), %s174_s30, 4294967168  ;;  %p888_p6 = scmp.eq.s32.totalorder %s707_s16, 0 }
  0x47   : > { %634 = dma.done.wait (%p888_p6), [#allocation6], 768   ;;  %p889_p8 = pmov %p888_p6 }
  0x48   : > { %v661_v0 = vmov 0.0   ;;  %vm662_vm0 = vmmov 0   ;;  %v526_v1 = vld [vmem:[#allocation5 + $0x28] sm:$0xff]   ;;  %v527_v2 = vld [vmem:[#allocation5 + $0x20] sm:$0xff]   ;;  %v528_v3 = vld [vmem:[#allocation5 + $0x18] sm:$0xff]   ;;  %vm269_vm1 = vcmask 785408  }
  0x49   : > { %636 = vsyncadd (%p889_p8), [#allocation6], 4294966528  ;;  %447 = vmatprep.subr.bf16.mxu0 %v661_v0  ;;  %459 = vmatprep.mubr.msk.bf16.mxu0 %vm662_vm0, %v661_v0  ;;  %v529_v4 = vld [vmem:[#allocation5 + $0x10] sm:$0xff]   ;;  %v530_v5 = vld [vmem:[#allocation5 + $0x8] sm:$0xff]   ;;  %s423_s18 = sshll.u32 %s807_s26, 4  ;;  %s439_s22 = sshll.u32 %s707_s16, 8 }
  0x4a   : > { %448 = vmatpush3.bf16.msra.mxu0 %v526_v1  ;;  %v531_v6 = vld [vmem:[#allocation5] sm:$0xff]   ;;  %v532_v7 = vld [vmem:[%s177_s4] sm:$0xff]   ;;  %s203_s29 = scalar_lea.vmem [#allocation7], %s423_s18  ;;  %s829_s8 = scalar_lea.hbm %s874_s3, %s439_s22 }
  0x4b   : > { %449 = vmatprep.subr.bf16.mxu0 %v661_v0  ;;  %v424_v8 = vld [vmem:[%s873_s2] ss:$0 sm:$0xff]  ;;  %s330_s17 = sshll.u32 %s203_s29, 4  ;;  %s317_s9 = scalar_lea.sflag [#allocation4], %s807_s26  ;;  %s824_s17 = int_to_ptr.vmem [resolvable:$true] %s330_s17 }
  0x4c   : > { %s587_s7 = scalar_lea.vmem %s824_s17, 256  ;;  %p890_p10 = scmp.ne.s32.totalorder %s884_s6, 0 }
  0x4d   : > { %p588_p3 = scmp.ne.s32.totalorder %s824_s17, %s587_s7  ;;  %s663_s16 = smov [#allocation7]  }
  0x4e   : > { %450 = vmatpush3.bf16.msra.mxu0 %v527_v2  ;;  %s591_s10 = sshll.u32 %s663_s16, 4  ;;  %s592_s10 = int_to_ptr.vmem [resolvable:$false] %s591_s10 }
  0x4f   : > { %451 = vmatprep.subr.bf16.mxu0 %v661_v0  ;;  %p589_p7 = pnand %p588_p3, %p890_p10  ;;  %s593_s11 = scalar_lea.vmem %s592_s10, 512 }
  0x50   : > { %p594_p11 = scmp.lt.s32.totalorder %s824_s17, %s592_s10  ;;  %p595_p12 = scmp.lt.s32.totalorder %s593_s11, %s587_s7 }
  0x51   : > { %p590_p9 = pneg %p589_p7 }
  0x52   : > { %452 = vmatpush3.bf16.msra.mxu0 %v528_v3  ;;  %p596_p13 = por %p595_p12, %p594_p11 }
  0x53   : > { %453 = vmatprep.subr.bf16.mxu0 %v661_v0 }
  0x54   : > { %p597_p0 = pnand %p596_p13, %p590_p9 }
  0x56   : > { %454 = vmatpush3.bf16.msra.mxu0 %v529_v4 }
  0x57   : > { %455 = vmatprep.subr.bf16.mxu0 %v661_v0 }
  0x5a   : > { %456 = vmatpush3.bf16.msra.mxu0 %v530_v5 }
  0x5b   : > { %457 = vmatprep.subr.bf16.mxu0 %v661_v0 }
  0x5e   : > { %458 = vmatpush3.bf16.msra.mxu0 %v531_v6 }
  0x61   : > { %460 = vmatmul.mubr.msk.bf16.vlgmr.msra.gmra.mxu0 %vm269_vm1, %v532_v7 }
 0x121   : > { %v307_v9 = vpop.f32.mrf.mxu0 }
 0x122   : > { %v308_v10 = vadd.f32 %v424_v8, %v307_v9 }
 0x123   : > { %v461_v11 = vpop.f32.mrf.mxu0 }
 0x124   : > { %314 = vst [vmem:[%s203_s29] sm:$0xff] %v308_v10 }
 0x125   : > { %v310_v12 = vpop.f32.mrf.mxu0 }
 0x126   : > { %v311_v13 = vadd.f32 %v424_v8, %v310_v12 }
 0x127   : > { %v462_v14 = vpop.f32.mrf.mxu0 }
 0x128   : > { %315 = vst [vmem:[%s203_s29 + $0x8] sm:$0xff] %v311_v13 }
 0x129   : > { %600 = shalt.err (!%p597_p0)
}
 0x12a   : > { %s601_s21 = scalar_lea.hbm %s829_s8, 256  ;;  %s605_s4 = scalar_lea.hbm %s874_s3, 1024 }
 0x12b   : > { %p602_p5 = scmp.ne.s32.totalorder %s829_s8, %s601_s21  ;;  %p606_p4 = scmp.lt.s32.totalorder %s829_s8, %s874_s3 }
 0x12c   : > { %p607_p6 = scmp.lt.s32.totalorder %s605_s4, %s601_s21 }
 0x12d   : > { %p603_p2 = pnand %p602_p5, %p890_p10 }
 0x12e   : > { %p608_p8 = por %p607_p6, %p606_p4 }
 0x12f   : > { %p604_p1 = pneg %p603_p2 }
 0x131   : > { %p609_p3 = pnand %p608_p8, %p604_p1 }
 0x133   : > { %612 = shalt.err (!%p609_p3)
}
 0x134   : > { %s664_s28 = smov 128   ;;  %s665_s29 = smov 8  }
 0x135   : > { %469 = dma.vmem_to_hbm [thread:$0]  (%p890_p10), %s824_s17, 256, %s829_s8, %s317_s9, %s664_s28, %s664_s28, %s665_s29  }
 0x136 PF: > { %p486_p7 = scmp.ge.s32.totalorder %s655_s15, 2  ;;  %s345_s22 = sand.u32 1, %s643_s12  }
 0x137   : > { %p891_p9 = scmp.ne.s32.totalorder %s880_s19, 0  ;;  %s346_s23 = scalar_lea.sflag [#allocation4], %s345_s22 }
 0x139   : > { %p480_p11 = pnand %p486_p7, %p891_p9 }
 0x13b   : > { %p481_p12 = pneg %p480_p11 }
 0x13d   : > { %638 = dma.done.wait (%p481_p12), %s346_s23, 256  }
 0x13e   : > { %640 = vsyncadd (%p481_p12), %s346_s23, 4294967040  ;;  %p17_p13 = scmp.ge.s32.totalorder %s739_s24, 6   ;;  %s892_s12 = smov %s647_s13 }
 0x13f   : > { %s893_s13 = smov %s651_s14  ;;  %s894_s14 = smov %s759_s5 }
 0x140   : > { %s895_s15 = smov %s739_s24  ;;  %19 = sbr.rel (!%p17_p13) target bundleno = 6 (0x6), region = 81 }
 0x145   :  { %351 = vsyncpa [#allocation3], 1 }
 0x146   :  { %353 = vsyncpa [#allocation3 + $0x1], 1 }
 0x147   :  { %354 = vsyncpa [#allocation6], 1 }
 0x148   :  { %355 = vsyncpa [#allocation4], 1 }
 0x149   :  { %357 = vsyncpa [#allocation4 + $0x1], 1 }

</bundles_post_ra>
